<compile_context>
chip_gen: v6e
topology: v6e:2x2x1
jax: 0.10.0
libtpu: 0.0.40
codegen_flags: <defaults>
</compile_context>

<pallas_src>
import jax
import jax.numpy as jnp
from jax.experimental import pallas as pl
from jax.experimental.pallas import tpu as pltpu


def _decimate_kernel(x_ref, sel_ref, o_ref):
  # x_ref:   (TM, 2*W)   each row = [input row 2i ; input row 2i+1] for one (n,c,i)
  # sel_ref: (2*W, Wout) one-hot column-selection matrix, sel[2j, j] = 1
  # o_ref:   (TM, Wout)  out[r, j] = x_ref[r, 2j] = x[n, c, 2i, 2j]
  o_ref[...] = jnp.dot(
      x_ref[...], sel_ref[...], preferred_element_type=jnp.float32
  ).astype(o_ref.dtype)


def _pick_row_tile(m, target=1024):
  """Largest sublane-aligned tile <= target that divides m; else the full m."""
  if m <= target:
    return m
  for t in range(target - target % 8, 7, -8):
    if m % t == 0:
      return t
  return m


def last_level_max_pool_forward(x):
  """LastLevelMaxPool.forward: [F.max_pool2d(x, kernel_size=1, stride=2, padding=0)].

  x: (N, C, H, W) float32, NCHW (same layout the PyTorch module consumes).
  Returns a one-element list, matching the PyTorch forward.
  """
  n, c, h, w = x.shape
  # kernel_size=1, stride=2, padding=0  =>  out[n, c, i, j] = x[n, c, 2i, 2j]
  # TODO(synk): odd H/W (max_pool2d's floor((H-1)/2)+1 output rule) not handled;
  # FPN p5 feature maps are even-sized.
  assert h % 2 == 0 and w % 2 == 0, "even spatial dims required"
  h_out, w_out = h // 2, w // 2

  m = n * c * h_out
  # Free row-major reshape: row r = (n, c, i) holds input rows 2i and 2i+1.
  x2 = x.reshape(m, 2 * w)

  # One-hot selection: column 2j of the even input row.
  j = jnp.arange(w_out)
  sel = jnp.zeros((2 * w, w_out), x.dtype).at[2 * j, j].set(1)

  tm = _pick_row_tile(m)
  grid_m = m // tm

  out2 = pl.pallas_call(
      _decimate_kernel,
      out_shape=jax.ShapeDtypeStruct((m, w_out), x.dtype),
      grid=(grid_m,),
      in_specs=[
          pl.BlockSpec((tm, 2 * w), lambda i: (i, 0)),
          pl.BlockSpec((2 * w, w_out), lambda i: (0, 0)),
      ],
      out_specs=pl.BlockSpec((tm, w_out), lambda i: (i, 0)),
      compiler_params=pltpu.CompilerParams(
          dimension_semantics=("parallel",)),
  )(x2, sel)

  return [out2.reshape(n, c, h_out, w_out)]


if __name__ == "__main__":
  key = jax.random.PRNGKey(0)
  N, C, H, W = 2, 4, 16, 16
  x = jax.random.normal(key, (N, C, H, W), jnp.float32)

  outs = jax.jit(last_level_max_pool_forward)(x)
  out = jax.block_until_ready(outs[0])

  ref = x[:, :, ::2, ::2]  # max over a 1x1 window == identity, so pure decimation
  assert out.shape == (N, C, H // 2, W // 2)
  assert bool(jnp.all(jnp.isfinite(out)))
  assert bool(jnp.allclose(out, ref, rtol=1e-6, atol=1e-6))
  print("KERNEL_OK")
</pallas_src>

<mosaic_0001>
module attributes {stable_mosaic.version = 11 : i64} {
  func.func @_decimate_kernel(%arg0: i32, %arg1: memref<64x32xf32, #tpu.memory_space<vmem>>, %arg2: memref<32x8xf32, #tpu.memory_space<vmem>>, %arg3: memref<64x8xf32, #tpu.memory_space<vmem>>) attributes {dimension_semantics = [#tpu.dimension_semantics<parallel>], iteration_bounds = array<i64: 1>, scalar_prefetch = 0 : i64, scratch_operands = 0 : i64, tpu.core_type = #tpu.core_type<tc>, window_params = [{transform_indices = @transform_0, window_bounds = array<i64: 64, 32>}, {pipeline_mode = #tpu.pipeline_mode<synchronous>, transform_indices = @transform_1, window_bounds = array<i64: 32, 8>}, {transform_indices = @transform_2, window_bounds = array<i64: 64, 8>}]} {
    %c0 = arith.constant 0 : index
    %c0_0 = arith.constant 0 : index
    %0 = vector.load %arg1[%c0, %c0_0] : memref<64x32xf32, #tpu.memory_space<vmem>>, vector<64x32xf32>
    %c0_1 = arith.constant 0 : index
    %c0_2 = arith.constant 0 : index
    %1 = vector.load %arg2[%c0_1, %c0_2] : memref<32x8xf32, #tpu.memory_space<vmem>>, vector<32x8xf32>
    %cst = arith.constant dense<0.000000e+00> : vector<64x8xf32>
    %2 = tpu.matmul %0, %1, %cst {dimension_numbers = #tpu.dot_dimension_numbers<[1], [0], [0], [1], [0, 0, 1, 1], [], []>} : vector<64x32xf32>, vector<32x8xf32>, vector<64x8xf32> -> vector<64x8xf32>
    %c0_3 = arith.constant 0 : index
    %c0_4 = arith.constant 0 : index
    %3 = vector.load %arg3[%c0_3, %c0_4] : memref<64x8xf32, #tpu.memory_space<vmem>>, vector<64x8xf32>
    tpu.vector_store %arg3[%c0_3, %c0_4], %2 {strides = array<i32>} : memref<64x8xf32, #tpu.memory_space<vmem>>, vector<64x8xf32>,
    return
  }
  func.func @transform_0(%arg0: i32) -> (i32, i32) {
    %c0_i32 = arith.constant 0 : i32
    %c0_i32_0 = arith.constant 0 : i32
    return %arg0, %c0_i32 : i32, i32
  }
  func.func @transform_1(%arg0: i32) -> (i32, i32) {
    %c0_i32 = arith.constant 0 : i32
    %c0_i32_0 = arith.constant 0 : i32
    %c0_i32_1 = arith.constant 0 : i32
    return %c0_i32, %c0_i32_0 : i32, i32
  }
  func.func @transform_2(%arg0: i32) -> (i32, i32) {
    %c0_i32 = arith.constant 0 : i32
    %c0_i32_0 = arith.constant 0 : i32
    return %arg0, %c0_i32 : i32, i32
  }
}

</mosaic_0001>

<bundles_post_ra>
// kernel: last_level_max_pool_forward.1
= control target key start
LH: loop header
LB: loop body
LE: loop exit
PB: predicated region body
PF: predicated region fallthrough
CT: control target
= control target key end

     0   :  { %s325_s0 = inlined_call_operand.vmem [shape: f32[64,32], index: 0, kind: input, shape index: {}]   ;;  %s326_s1 = inlined_call_operand.vmem [shape: f32[32,8], index: 1, kind: input, shape index: {}]   ;;  %s327_s2 = inlined_call_operand.hbm [shape: f32[64,8], index: 2, kind: output, shape index: {}]  }
   0x1   :  { %v23_v0 = vld [vmem:[%s326_s1 + $0x18] sm:$0xff]  ;;  %v22_v1 = vld [vmem:[%s326_s1 + $0x10] sm:$0xff]  ;;  %v21_v2 = vld [vmem:[%s326_s1 + $0x8] sm:$0xff] }
   0x2   :  { %199 = vmatprep.subr.mxu0 %v23_v0  ;;  %219 = vmatprep.subr.mxu1 %v23_v0  ;;  %v20_v3 = vld [vmem:[%s326_s1] sm:$0xff] }
   0x3   :  { %200 = vmatpush3.msra.mxu0 %v23_v0  ;;  %223 = vmatpush3.msra.mxu1 %v23_v0 }
   0x4   :  { %201 = vmatprep.subr.mxu0 %v22_v1  ;;  %220 = vmatprep.subr.mxu1 %v22_v1 }
   0x5   :  { %202 = vmatpush3.msra.mxu0 %v22_v1  ;;  %224 = vmatpush3.msra.mxu1 %v22_v1 }
   0x6   :  { %7 = vsyncpa [#allocation3], 0  ;;  %203 = vmatprep.subr.mxu0 %v21_v2  ;;  %221 = vmatprep.subr.mxu1 %v21_v2  ;;  %v12_v4 = vld [vmem:[%s325_s0] sm:$0xff]  ;;  %vm24_vm0 = vcmask 261120   ;;  %v13_v6 = vld [vmem:[%s325_s0 + $0x8] sm:$0xff]  ;;  %vm154_vm1 = vcmask 64512  }
   0x7   :  { %204 = vmatpush3.msra.mxu0 %v21_v2  ;;  %225 = vmatpush3.msra.mxu1 %v21_v2  ;;  %v16_v5 = vld [vmem:[%s325_s0 + $0x20] sm:$0xff]  ;;  %v17_v7 = vld [vmem:[%s325_s0 + $0x28] sm:$0xff]  ;;  %v14_v8 = vld [vmem:[%s325_s0 + $0x10] sm:$0xff]  ;;  %s252_s4 = smov [#allocation2]  }
   0x8   :  { %205 = vmatprep.subr.mxu0 %v20_v3  ;;  %222 = vmatprep.subr.mxu1 %v20_v3  ;;  %v18_v9 = vld [vmem:[%s325_s0 + $0x30] sm:$0xff]  ;;  %v15_v10 = vld [vmem:[%s325_s0 + $0x18] sm:$0xff]  ;;  %s168_s5 = sshll.u32 %s252_s4, 4  ;;  %s169_s5 = int_to_ptr.vmem [resolvable:$true] %s168_s5 }
   0x9   :  { %206 = vmatpush3.msra.mxu0 %v20_v3  ;;  %226 = vmatpush3.msra.mxu1 %v20_v3  ;;  %v19_v11 = vld [vmem:[%s325_s0 + $0x38] sm:$0xff]  ;;  %s230_s0 = scalar_lea.vmem %s169_s5, 1024  ;;  %p235_p1 = scmp.lt.s32.totalorder %s169_s5, %s169_s5 }
   0xa   :  { %207 = vmatprep.mubr.msk.f32.mxu0 %vm24_vm0, %v12_v4  ;;  %213 = vmatprep.mubr.msk.f32.mxu1 %vm24_vm0, %v16_v5  ;;  %p231_p0 = scmp.ne.s32.totalorder %s169_s5, %s230_s0  ;;  %p236_p2 = scmp.lt.s32.totalorder %s230_s0, %s230_s0 }
   0xb   :  { %208 = vmatmul.mubr.msk.f32.vlgmr.msra.gmra.mxu0 %vm24_vm0, %v13_v6  ;;  %214 = vmatmul.mubr.msk.f32.vlgmr.msra.gmra.mxu1 %vm24_vm0, %v17_v7 }
   0xc   :  { %210 = vmatprep.mubr.msk.f32.mxu0 %vm24_vm0, %v14_v8  ;;  %216 = vmatprep.mubr.msk.f32.mxu1 %vm24_vm0, %v18_v9  ;;  %p237_p3 = por %p236_p2, %p235_p1 }
   0xe   :  { %p238_p4 = pnand %p237_p3, %p231_p0 }
   0xf   :  { %211 = vmatmul.mubr.msk.f32.gmra.mxu0 %vm24_vm0, %v15_v10  ;;  %217 = vmatmul.mubr.msk.f32.gmra.mxu1 %vm24_vm0, %v19_v11 }
  0xcb   :  { %v209_v12 = vpop.f32.mrf.mxu0  ;;  %v215_v13 = vpop.f32.mrf.mxu1 }
  0xcc   :  { %156 = vst.msk [vmem:[#allocation2 + $0x8] sm:$0xff] %vm154_vm1, %v209_v12  ;;  %160 = vst.msk [vmem:[#allocation2 + $0x28] sm:$0xff] %vm154_vm1, %v215_v13 }
  0xcd   :  { %v115_v14 = vpop.f32.mrf.mxu0  ;;  %v135_v15 = vpop.f32.mrf.mxu1 }
  0xce   :  { %155 = vst.msk [vmem:[#allocation2] sm:$0xff] %vm154_vm1, %v115_v14  ;;  %159 = vst.msk [vmem:[#allocation2 + $0x20] sm:$0xff] %vm154_vm1, %v135_v15 }
  0xcf   :  { %v212_v16 = vpop.f32.mrf.mxu0  ;;  %v218_v17 = vpop.f32.mrf.mxu1 }
  0xd0   :  { %158 = vst.msk [vmem:[#allocation2 + $0x18] sm:$0xff] %vm154_vm1, %v212_v16  ;;  %162 = vst.msk [vmem:[#allocation2 + $0x38] sm:$0xff] %vm154_vm1, %v218_v17 }
  0xd1   :  { %v125_v18 = vpop.f32.mrf.mxu0  ;;  %v145_v19 = vpop.f32.mrf.mxu1 }
  0xd2   :  { %157 = vst.msk [vmem:[#allocation2 + $0x10] sm:$0xff] %vm154_vm1, %v125_v18  ;;  %161 = vst.msk [vmem:[#allocation2 + $0x30] sm:$0xff] %vm154_vm1, %v145_v19 }
  0xd3   :  { %241 = shalt.err (!%p238_p4)
}
  0xd4   :  { %s253_s6 = smov 128   ;;  %s254_s7 = smov 8  }
  0xd5   :  { %174 = dma.vmem_to_hbm [thread:$0]  %s169_s5, 1024, %s327_s2, [#allocation3], %s253_s6, %s253_s6, %s254_s7  }
  0xd6   :  { %250 = dma.done.wait [#allocation3], 1024  }
  0xd7   :  { %251 = vsyncadd [#allocation3], 4294966272 }
  0xd8   :  { %178 = vsyncpa [#allocation3], 1 }

</bundles_post_ra>
